<compile_context>
chip_gen: v6e
topology: v6e:2x2x1
jax: 0.10.0
libtpu: 0.0.40
codegen_flags: <defaults>
</compile_context>

<pallas_src>
import functools

import jax
import jax.numpy as jnp
from jax.experimental import pallas as pl
from jax.experimental.pallas import tpu as pltpu

LANE = 128
SUBLANE = 8


# ---------------------------------------------------------------------------
# Pallas kernel: patch-embed matmul + bias + ReLU + sum-pool + head linear
# ---------------------------------------------------------------------------
def classifier_kernel(patches_ref, w_enc_ref, b_enc_ref, w_head_ref, b_head_ref,
                      out_ref, *, patches_per_image):
    rows, _ = patches_ref.shape
    P = patches_per_image
    tb = rows // P

    # One fused MXU matmul over all patches in the batch tile (M = TB*P rows).
    feats = jnp.dot(patches_ref[...], w_enc_ref[...],
                    preferred_element_type=jnp.float32)          # f32 [TB*P, Dp]

    # Bias + ReLU in f32 on the VPU (bias is a single [1, Dp] row).
    feats = jnp.maximum(feats + b_enc_ref[...], 0.0)

    # Global average pool: 1/P is folded into w_head, so a plain sum suffices.
    # (P = 16 is a multiple of 8, so this reshape stays within (8,128) tiles.)
    pooled = feats.reshape(tb, P, feats.shape[-1]).sum(axis=1)   # f32 [TB, Dp]

    # Classification head: bf16 inputs (single MXU pass on v5e), f32 accumulate,
    # lane-dense padded output -> full 128-wide unmasked stores.
    logits = jnp.dot(pooled.astype(jnp.bfloat16), w_head_ref[...],
                     preferred_element_type=jnp.float32)         # f32 [TB, NCp]
    out_ref[...] = (logits + b_head_ref[...]).astype(out_ref.dtype)


# ---------------------------------------------------------------------------
# Batch-tile selection (padding + grid >= 2 for v7x when the batch allows it)
# ---------------------------------------------------------------------------
def _choose_batch_tile(B):
    """Return (B_pad, TB): sublane-padded batch and batch-tile size."""
    if B <= SUBLANE:
        return B, B                       # tiny batch: single full-batch tile
    B_pad = pl.cdiv(B, SUBLANE) * SUBLANE
    # Big tiles amortize the ~0.35us per-grid-step overhead and feed the MXU
    # (M = TB*P rows); keep grid >= 2 so the "parallel" batch axis can shard
    # across v7x's 2 TensorCores. TB=256 double-buffered is ~1 MiB of patches,
    # far under the v7x 64 MiB / default 32 MiB scoped VMEM.
    tb = min(256, max(SUBLANE, (B_pad // 2) // SUBLANE * SUBLANE))
    while B_pad % tb != 0:
        tb -= SUBLANE
    return B_pad, tb


# ---------------------------------------------------------------------------
# Wrapper: layout plumbing + pallas_call
# ---------------------------------------------------------------------------
def image_classifier_forward(x_nchw, w_conv, b_conv, w_head, b_head, *, patch):
    """x_nchw: [B, C, H, W] float32 (PyTorch NCHW convention)."""
    B, C, H, W = x_nchw.shape
    D = w_conv.shape[0]
    NC = w_head.shape[0]
    Ph, Pw = H // patch, W // patch
    P = Ph * Pw
    K = C * patch * patch

    Dp = pl.cdiv(D, LANE) * LANE     # feature dim padded to 128 lanes
    NCp = pl.cdiv(NC, LANE) * LANE   # class dim padded to 128 lanes

    # --- im2col (stride == kernel, non-overlapping patches) in bf16, collapsed
    # to a flat row matrix so the kernel LHS needs no in-kernel reshape.
    patches = x_nchw.astype(jnp.bfloat16).reshape(B, C, Ph, patch, Pw, patch)
    patches = patches.transpose(0, 2, 4, 1, 3, 5).reshape(B * P, K)   # [B*P, K]

    B_pad, TB = _choose_batch_tile(B)
    if B_pad != B:
        patches = jnp.concatenate(
            [patches, jnp.zeros(((B_pad - B) * P, K), patches.dtype)], axis=0)
    grid = (B_pad // TB,)

    # Zero-padded, lane-dense weights/biases. Padded lanes are provably zero in
    # the output: zero b_enc lanes -> ReLU(0)=0, zero w_head rows/cols.
    w_enc = jnp.zeros((K, Dp), jnp.bfloat16).at[:, :D].set(
        w_conv.reshape(D, K).T.astype(jnp.bfloat16))                   # [K, Dp]
    b_enc = jnp.zeros((1, Dp), jnp.float32).at[:, :D].set(
        b_conv.reshape(1, D).astype(jnp.float32))
    # Fold the 1/P mean-pool scale into the head weight; store bf16 for the MXU.
    w_head_p = jnp.zeros((Dp, NCp), jnp.bfloat16).at[:D, :NC].set(
        (w_head.T.astype(jnp.float32) / P).astype(jnp.bfloat16))       # [Dp, NCp]
    b_head_p = jnp.zeros((1, NCp), jnp.float32).at[:, :NC].set(
        b_head.reshape(1, NC).astype(jnp.float32))

    flops = 2 * B_pad * P * K * Dp + 2 * B_pad * Dp * NCp
    bytes_accessed = (B_pad * P * K * 2            # patches (bf16)
                      + K * Dp * 2 + Dp * 4        # encoder weight + bias
                      + Dp * NCp * 2 + NCp * 4     # head weight + bias
                      + B_pad * NCp * 4)           # logits out (f32)

    kernel = functools.partial(classifier_kernel, patches_per_image=P)

    out = pl.pallas_call(
        kernel,
        out_shape=jax.ShapeDtypeStruct((B_pad, NCp), jnp.float32),
        grid_spec=pltpu.PrefetchScalarGridSpec(
            num_scalar_prefetch=0,
            grid=grid,
            in_specs=[
                pl.BlockSpec((TB * P, K), lambda i: (i, 0)),   # patch rows tile
                pl.BlockSpec((K, Dp), lambda i: (0, 0)),       # encoder weight
                pl.BlockSpec((1, Dp), lambda i: (0, 0)),       # encoder bias
                pl.BlockSpec((Dp, NCp), lambda i: (0, 0)),     # head weight
                pl.BlockSpec((1, NCp), lambda i: (0, 0)),      # head bias
            ],
            out_specs=pl.BlockSpec((TB, NCp), lambda i: (i, 0)),
        ),
        compiler_params=pltpu.CompilerParams(
            dimension_semantics=("parallel",),        # megacore / v7x 2-TC shard
            vmem_limit_bytes=32 * 1024 * 1024,        # explicit: v5e default is 16 MiB
        ),
        cost_estimate=pl.CostEstimate(
            flops=flops, transcendentals=0, bytes_accessed=bytes_accessed),
    )(patches, w_enc, b_enc, w_head_p, b_head_p)

    return out[:B, :NC]   # drop batch padding and lane padding on the class dim


# ---------------------------------------------------------------------------
# Pure-JAX f32 reference (mirrors the PyTorch forward)
# ---------------------------------------------------------------------------
def reference_forward(x_nchw, w_conv, b_conv, w_head, b_head, *, patch):
    B, C, H, W = x_nchw.shape
    D = w_conv.shape[0]
    Ph, Pw = H // patch, W // patch
    patches = x_nchw.reshape(B, C, Ph, patch, Pw, patch)
    patches = patches.transpose(0, 2, 4, 1, 3, 5).reshape(B, Ph * Pw, -1)
    feats = patches @ w_conv.reshape(D, -1).T + b_conv          # conv as matmul
    feats = jnp.maximum(feats, 0.0)                             # ReLU
    pooled = feats.mean(axis=1)                                 # global avg pool
    return pooled @ w_head.T + b_head                           # classification head


if __name__ == "__main__":
    # Small shapes consistent with the module's forward.
    B, C, H, W = 2, 4, 16, 16
    PATCH = 4
    D = 32          # encoder feature dim
    NUM_CLASSES = 10

    key = jax.random.PRNGKey(0)
    kx, kw1, kb1, kw2, kb2 = jax.random.split(key, 5)

    x = jax.random.normal(kx, (B, C, H, W), dtype=jnp.float32)

    # Deterministic parameter init (PyTorch-default-like uniform bounds).
    fan_in_conv = C * PATCH * PATCH
    bnd1 = 1.0 / jnp.sqrt(fan_in_conv)
    w_conv = jax.random.uniform(kw1, (D, C, PATCH, PATCH), jnp.float32, -bnd1, bnd1)
    b_conv = jax.random.uniform(kb1, (D,), jnp.float32, -bnd1, bnd1)

    bnd2 = 1.0 / jnp.sqrt(D)
    w_head = jax.random.uniform(kw2, (NUM_CLASSES, D), jnp.float32, -bnd2, bnd2)
    b_head = jax.random.uniform(kb2, (NUM_CLASSES,), jnp.float32, -bnd2, bnd2)

    out = image_classifier_forward(x, w_conv, b_conv, w_head, b_head, patch=PATCH)
    out = jax.block_until_ready(out)

    ref = reference_forward(x, w_conv, b_conv, w_head, b_head, patch=PATCH)
    assert out.shape == (B, NUM_CLASSES)
    # bf16 MXU inputs (f32 accumulation) -> loosened tolerance vs f32 reference.
    assert jnp.allclose(out, ref, atol=2e-2, rtol=2e-2), (
        f"mismatch vs reference, max abs diff = {jnp.max(jnp.abs(out - ref))}")

    print("KERNEL_OK")
</pallas_src>

<mosaic_0001>
module attributes {stable_mosaic.version = 11 : i64} {
  func.func @classifier_kernel(%arg0: i32, %arg1: memref<32x64xbf16, #tpu.memory_space<vmem>>, %arg2: memref<64x128xbf16, #tpu.memory_space<vmem>>, %arg3: memref<1x128xf32, #tpu.memory_space<vmem>>, %arg4: memref<128x128xbf16, #tpu.memory_space<vmem>>, %arg5: memref<1x128xf32, #tpu.memory_space<vmem>>, %arg6: memref<2x128xf32, #tpu.memory_space<vmem>>) attributes {dimension_semantics = [#tpu.dimension_semantics<parallel>], iteration_bounds = array<i64: 1>, scalar_prefetch = 0 : i64, scratch_operands = 0 : i64, tpu.core_type = #tpu.core_type<tc>, window_params = [{transform_indices = @transform_0, window_bounds = array<i64: 32, 64>}, {pipeline_mode = #tpu.pipeline_mode<synchronous>, transform_indices = @transform_1, window_bounds = array<i64: 64, 128>}, {pipeline_mode = #tpu.pipeline_mode<synchronous>, transform_indices = @transform_2, window_bounds = array<i64: 1, 128>}, {pipeline_mode = #tpu.pipeline_mode<synchronous>, transform_indices = @transform_3, window_bounds = array<i64: 128, 128>}, {pipeline_mode = #tpu.pipeline_mode<synchronous>, transform_indices = @transform_4, window_bounds = array<i64: 1, 128>}, {transform_indices = @transform_5, window_bounds = array<i64: 2, 128>}]} {
    %c0 = arith.constant 0 : index
    %c0_0 = arith.constant 0 : index
    %0 = vector.load %arg1[%c0, %c0_0] : memref<32x64xbf16, #tpu.memory_space<vmem>>, vector<32x64xbf16>
    %c0_1 = arith.constant 0 : index
    %c0_2 = arith.constant 0 : index
    %1 = vector.load %arg2[%c0_1, %c0_2] : memref<64x128xbf16, #tpu.memory_space<vmem>>, vector<64x128xbf16>
    %cst = arith.constant dense<0.000000e+00> : vector<32x128xf32>
    %2 = tpu.matmul %0, %1, %cst {dimension_numbers = #tpu.dot_dimension_numbers<[1], [0], [0], [1], [0, 0, 1, 1], [], []>} : vector<32x64xbf16>, vector<64x128xbf16>, vector<32x128xf32> -> vector<32x128xf32>
    %c0_3 = arith.constant 0 : index
    %c0_4 = arith.constant 0 : index
    %3 = vector.load %arg3[%c0_3, %c0_4] : memref<1x128xf32, #tpu.memory_space<vmem>>, vector<1x128xf32>
    %4 = vector.broadcast %3 : vector<1x128xf32> to vector<32x128xf32>
    %5 = arith.addf %2, %4 : vector<32x128xf32>
    %cst_5 = arith.constant 0.000000e+00 : f32
    %6 = vector.broadcast %cst_5 : f32 to vector<32x128xf32>
    %7 = arith.maximumf %5, %6 : vector<32x128xf32>
    %8 = vector.shape_cast %7 : vector<32x128xf32> to vector<2x16x128xf32>
    %cst_6 = arith.constant dense<0.000000e+00> : vector<2x128xf32>
    %9 = vector.multi_reduction <add>, %8, %cst_6 [1] : vector<2x16x128xf32> to vector<2x128xf32>
    %10 = arith.truncf %9 : vector<2x128xf32> to vector<2x128xbf16>
    %c0_7 = arith.constant 0 : index
    %c0_8 = arith.constant 0 : index
    %11 = vector.load %arg4[%c0_7, %c0_8] : memref<128x128xbf16, #tpu.memory_space<vmem>>, vector<128x128xbf16>
    %cst_9 = arith.constant dense<0.000000e+00> : vector<2x128xf32>
    %12 = tpu.matmul %10, %11, %cst_9 {dimension_numbers = #tpu.dot_dimension_numbers<[1], [0], [0], [1], [0, 0, 1, 1], [], []>} : vector<2x128xbf16>, vector<128x128xbf16>, vector<2x128xf32> -> vector<2x128xf32>
    %c0_10 = arith.constant 0 : index
    %c0_11 = arith.constant 0 : index
    %13 = vector.load %arg5[%c0_10, %c0_11] : memref<1x128xf32, #tpu.memory_space<vmem>>, vector<1x128xf32>
    %14 = vector.broadcast %13 : vector<1x128xf32> to vector<2x128xf32>
    %15 = arith.addf %12, %14 : vector<2x128xf32>
    %c0_12 = arith.constant 0 : index
    %c0_13 = arith.constant 0 : index
    %16 = vector.load %arg6[%c0_12, %c0_13] : memref<2x128xf32, #tpu.memory_space<vmem>>, vector<2x128xf32>
    tpu.vector_store %arg6[%c0_12, %c0_13], %15 {strides = array<i32>} : memref<2x128xf32, #tpu.memory_space<vmem>>, vector<2x128xf32>,
    return
  }
  func.func @transform_0(%arg0: i32) -> (i32, i32) {
    %c0_i32 = arith.constant 0 : i32
    %c0_i32_0 = arith.constant 0 : i32
    return %arg0, %c0_i32 : i32, i32
  }
  func.func @transform_1(%arg0: i32) -> (i32, i32) {
    %c0_i32 = arith.constant 0 : i32
    %c0_i32_0 = arith.constant 0 : i32
    %c0_i32_1 = arith.constant 0 : i32
    return %c0_i32, %c0_i32_0 : i32, i32
  }
  func.func @transform_2(%arg0: i32) -> (i32, i32) {
    %c0_i32 = arith.constant 0 : i32
    %c0_i32_0 = arith.constant 0 : i32
    %c0_i32_1 = arith.constant 0 : i32
    return %c0_i32, %c0_i32_0 : i32, i32
  }
  func.func @transform_3(%arg0: i32) -> (i32, i32) {
    %c0_i32 = arith.constant 0 : i32
    %c0_i32_0 = arith.constant 0 : i32
    %c0_i32_1 = arith.constant 0 : i32
    return %c0_i32, %c0_i32_0 : i32, i32
  }
  func.func @transform_4(%arg0: i32) -> (i32, i32) {
    %c0_i32 = arith.constant 0 : i32
    %c0_i32_0 = arith.constant 0 : i32
    %c0_i32_1 = arith.constant 0 : i32
    return %c0_i32, %c0_i32_0 : i32, i32
  }
  func.func @transform_5(%arg0: i32) -> (i32, i32) {
    %c0_i32 = arith.constant 0 : i32
    %c0_i32_0 = arith.constant 0 : i32
    return %arg0, %c0_i32 : i32, i32
  }
}

</mosaic_0001>

<bundles_post_ra>
// kernel: tpu_custom_call.1
= control target key start
LH: loop header
LB: loop body
LE: loop exit
PB: predicated region body
PF: predicated region fallthrough
CT: control target
= control target key end

     0   :  { %10 = vsyncpa [#allocation3], 0  ;;  %s557_s0 = inlined_call_operand.hbm [shape: bf16[32,64], index: 0, kind: input, shape index: {}]   ;;  %s558_s1 = inlined_call_operand.hbm [shape: bf16[64,128], index: 1, kind: input, shape index: {}]   ;;  %s559_s2 = inlined_call_operand.vmem [shape: f32[1,128], index: 2, kind: input, shape index: {}]   ;;  %s560_s3 = inlined_call_operand.hbm [shape: bf16[128,128], index: 3, kind: input, shape index: {}]   ;;  %s561_s4 = inlined_call_operand.vmem [shape: f32[1,128], index: 4, kind: input, shape index: {}]   ;;  %s562_s5 = inlined_call_operand.hbm [shape: f32[2,128], index: 5, kind: output, shape index: {}]  }
   0x1   :  { %11 = vsyncpa [#allocation6], 0 }
   0x2   :  { %12 = vsyncpa [#allocation4], 0  ;;  %s501_s18 = smov [#allocation5]   ;;  %s502_s20 = smov [#allocation2]  }
   0x3   :  { %s30_s19 = sshll.u32 %s501_s18, 4  ;;  %s18_s21 = sshll.u32 %s502_s20, 4  ;;  %s31_s19 = int_to_ptr.vmem [resolvable:$true] %s30_s19  ;;  %s19_s21 = int_to_ptr.vmem [resolvable:$true] %s18_s21 }
   0x4   :  { %s423_s22 = scalar_lea.vmem %s31_s19, 512  ;;  %p428_p1 = scmp.lt.s32.totalorder %s31_s19, %s31_s19 }
   0x5   :  { %p424_p0 = scmp.ne.s32.totalorder %s31_s19, %s423_s22  ;;  %p429_p2 = scmp.lt.s32.totalorder %s423_s22, %s423_s22 }
   0x7   :  { %p430_p3 = por %p429_p2, %p428_p1 }
   0x9   :  { %p431_p4 = pnand %p430_p3, %p424_p0 }
   0xb   :  { %434 = shalt.err (!%p431_p4)
}
   0xc   :  { %s503_s23 = smov 64   ;;  %s504_s24 = smov 4  }
   0xd   :  { %36 = dma.hbm_to_vmem [thread:$0]  %s558_s1, 512, %s31_s19, [#allocation6], %s503_s23, %s503_s23, %s504_s24  }
   0xe   :  { %s443_s27 = scalar_lea.vmem %s19_s21, 256  ;;  %p448_p6 = scmp.lt.s32.totalorder %s19_s21, %s19_s21 }
   0xf   :  { %p444_p5 = scmp.ne.s32.totalorder %s19_s21, %s443_s27  ;;  %p449_p7 = scmp.lt.s32.totalorder %s443_s27, %s443_s27 }
  0x11   :  { %p450_p8 = por %p449_p7, %p448_p6 }
  0x13   :  { %p451_p9 = pnand %p450_p8, %p444_p5 }
  0x15   :  { %454 = shalt.err (!%p451_p9)
}
  0x16   :  { %24 = dma.hbm_to_vmem [thread:$0]  %s557_s0, 256, %s19_s21, [#allocation3], %s503_s23, %s503_s23, %s504_s24  }
  0x17   :  { %s505_s30 = smov [#allocation7]  }
  0x18   :  { %s44_s6 = sshll.u32 %s505_s30, 4  ;;  %s45_s6 = int_to_ptr.vmem [resolvable:$true] %s44_s6 }
  0x19   :  { %s463_s7 = scalar_lea.vmem %s45_s6, 1024  ;;  %p468_p11 = scmp.lt.s32.totalorder %s45_s6, %s45_s6 }
  0x1a   :  { %p464_p10 = scmp.ne.s32.totalorder %s45_s6, %s463_s7  ;;  %p469_p12 = scmp.lt.s32.totalorder %s463_s7, %s463_s7 }
  0x1c   :  { %p470_p13 = por %p469_p12, %p468_p11 }
  0x1e   :  { %p471_p0 = pnand %p470_p13, %p464_p10 }
  0x20   :  { %474 = shalt.err (!%p471_p0)
}
  0x21   :  { %50 = dma.hbm_to_vmem [thread:$0]  %s560_s3, 1024, %s45_s6, [#allocation6], %s503_s23, %s503_s23, %s504_s24  }
  0x22   :  { %495 = dma.done.wait [#allocation3], 256  }
  0x23   :  { %496 = vsyncadd [#allocation3], 4294967040 }
  0x24   :  { %497 = dma.done.wait [#allocation6], 1536  }
  0x25   :  { %498 = vsyncadd [#allocation6], 4294965760  ;;  %v401_v0 = vld [vmem:[#allocation5 + $0x18] sm:$0xff]   ;;  %v402_v1 = vld [vmem:[#allocation5 + $0x10] sm:$0xff]   ;;  %vm116_vm0 = vcmask 523264   ;;  %v506_v7 = vmov 0.0  }
  0x26   :  { %361 = vmatprep.subr.bf16.mxu0 %v401_v0  ;;  %v403_v2 = vld [vmem:[#allocation5 + $0x8] sm:$0xff]   ;;  %v405_v3 = vld [vmem:[#allocation2] sm:$0xff]   ;;  %v404_v4 = vld [vmem:[#allocation5] sm:$0xff]   ;;  %373 = vmatprep.subr.bf16.mxu1 %v506_v7  ;;  %vm507_vm1 = vmmov 0   ;;  %vm219_vm2 = vcmask 1041409   ;;  %s508_s10 = smov [#allocation8]  }
  0x27   :  { %362 = vmatpush3.bf16.msra.mxu0 %v401_v0  ;;  %369 = vmatprep.mubr.msk.bf16.mxu0 %vm116_vm0, %v405_v3  ;;  %v406_v5 = vld [vmem:[#allocation2 + $0x8] sm:$0xff]   ;;  %v408_v8 = vld [vmem:[#allocation7 + $0x30] sm:$0xff]   ;;  %v409_v9 = vld [vmem:[#allocation7 + $0x28] sm:$0xff]   ;;  %s318_s11 = sshll.u32 %s508_s10, 4  ;;  %s319_s11 = int_to_ptr.vmem [resolvable:$true] %s318_s11 }
  0x28   :  { %363 = vmatprep.subr.bf16.mxu0 %v402_v1  ;;  %v407_v6 = vld [vmem:[#allocation7 + $0x38] sm:$0xff]   ;;  %v410_v10 = vld [vmem:[#allocation7 + $0x20] sm:$0xff]   ;;  %v412_v12 = vld [vmem:[#allocation7 + $0x10] sm:$0xff]   ;;  %389 = vmatprep.mubr.msk.bf16.mxu1 %vm507_vm1, %v506_v7  ;;  %s475_s12 = scalar_lea.vmem %s319_s11, 32  ;;  %p480_p2 = scmp.lt.s32.totalorder %s319_s11, %s319_s11 }
  0x29   :  { %374 = vmatpush3.bf16.msra.mxu1 %v407_v6  ;;  %v411_v11 = vld [vmem:[#allocation7 + $0x18] sm:$0xff]   ;;  %v413_v13 = vld [vmem:[#allocation7 + $0x8] sm:$0xff]   ;;  %v414_v14 = vld [vmem:[#allocation7] sm:$0xff]   ;;  %p476_p1 = scmp.ne.s32.totalorder %s319_s11, %s475_s12  ;;  %p481_p3 = scmp.lt.s32.totalorder %s475_s12, %s475_s12 }
  0x2a   :  { %375 = vmatprep.subr.bf16.mxu1 %v506_v7  ;;  %v328_v16 = vld [vmem:[%s559_s2] ss:$0 sm:$0xff] }
  0x2b   :  { %364 = vmatpush3.bf16.msra.mxu0 %v402_v1  ;;  %v337_v48 = vld [vmem:[%s561_s4] ss:$0 sm:$0xff]  ;;  %p482_p4 = por %p481_p3, %p480_p2 }
  0x2c   :  { %365 = vmatprep.subr.bf16.mxu0 %v403_v2 }
  0x2d   :  { %376 = vmatpush3.bf16.msra.mxu1 %v408_v8  ;;  %p483_p5 = pnand %p482_p4, %p476_p1 }
  0x2e   :  { %377 = vmatprep.subr.bf16.mxu1 %v506_v7 }
  0x2f   :  { %366 = vmatpush3.bf16.msra.mxu0 %v403_v2 }
  0x30   :  { %367 = vmatprep.subr.bf16.mxu0 %v404_v4 }
  0x31   :  { %378 = vmatpush3.bf16.msra.mxu1 %v409_v9 }
  0x32   :  { %379 = vmatprep.subr.bf16.mxu1 %v506_v7 }
  0x33   :  { %368 = vmatpush3.bf16.msra.mxu0 %v404_v4 }
  0x35   :  { %380 = vmatpush3.bf16.msra.mxu1 %v410_v10 }
  0x36   :  { %370 = vmatmul.mubr.msk.bf16.vlgmr.msra.gmra.mxu0 %vm116_vm0, %v406_v5  ;;  %381 = vmatprep.subr.bf16.mxu1 %v506_v7 }
  0x39   :  { %382 = vmatpush3.bf16.msra.mxu1 %v411_v11 }
  0x3a   :  { %383 = vmatprep.subr.bf16.mxu1 %v506_v7 }
  0x3d   :  { %384 = vmatpush3.bf16.msra.mxu1 %v412_v12 }
  0x3e   :  { %385 = vmatprep.subr.bf16.mxu1 %v506_v7 }
  0x41   :  { %386 = vmatpush3.bf16.msra.mxu1 %v413_v13 }
  0x42   :  { %387 = vmatprep.subr.bf16.mxu1 %v506_v7 }
  0x45   :  { %388 = vmatpush3.bf16.msra.mxu1 %v414_v14 }
  0xf6   :  { %v371_v15 = vpop.f32.mrf.mxu0 }
  0xf7   :  { %v166_v18 = vadd.f32 %v371_v15, %v328_v16 }
  0xf8   :  { %v157_v17 = vpop.f32.mrf.mxu0 }
  0xf9   :  { %v158_v20 = vadd.f32 %v328_v16, %v157_v17  ;;  %v174_v23 = vmax.f32 %v166_v18, 0.0 }
  0xfa   :  { %v372_v19 = vpop.f32.mrf.mxu0 }
  0xfb   :  { %v169_v21 = vadd.f32 %v372_v19, %v328_v16  ;;  %v172_v26 = vmax.f32 %v158_v20, 0.0 }
  0xfc   :  { %v160_v22 = vpop.f32.mrf.mxu0 }
  0xfd   :  { %v175_v24 = vmax.f32 %v169_v21, 0.0  ;;  %v161_v25 = vadd.f32 %v328_v16, %v160_v22 }
  0xff   :  { %v183_v27 = vadd.f32 %v175_v24, %v174_v23  ;;  %v173_v28 = vmax.f32 %v161_v25, 0.0 }
 0x101   :  { %v184_v29 = vrot.slane %v183_v27, 4  ;;  %v176_v30 = vadd.f32 %v173_v28, %v172_v26 }
 0x103   :  { %v185_v31 = vadd.f32 %v184_v29, %v183_v27  ;;  %v177_v32 = vrot.slane %v176_v30, 4 }
 0x105   :  { %v186_v33 = vrot.slane %v185_v31, 2  ;;  %v178_v34 = vadd.f32 %v177_v32, %v176_v30 }
 0x107   :  { %v187_v35 = vadd.f32 %v186_v33, %v185_v31  ;;  %v179_v36 = vrot.slane %v178_v34, 2 }
 0x109   :  { %v188_v37 = vrot.slane %v187_v35, 1  ;;  %v180_v38 = vadd.f32 %v179_v36, %v178_v34 }
 0x10b   :  { %v189_v39 = vadd.f32 %v188_v37, %v187_v35  ;;  %v181_v40 = vrot.slane %v180_v38, 1 }
 0x10d   :  { %v182_v41 = vadd.f32 %v181_v40, %v180_v38  ;;  %v191_v42 = vpack.c.bf16 %v189_v39, %v189_v39 }
 0x10f   :  { %v190_v43 = vpack.c.bf16 %v182_v41, %v182_v41  ;;  %v218_v45 = vunpack.c.l.b16 %v191_v42 }
 0x111   :  { %v217_v44 = vunpack.c.l.b16 %v190_v43 }
 0x113   :  { %v220_v46 = vsel %vm219_vm2, %v218_v45, %v217_v44 }
 0x114   :  { %v221_v47 = vpack.c.b16 %v220_v46, %v220_v46 }
 0x116   :  { %390 = vmatmul.mubr.bf16.vlgmr.msra.gmra.mxu1 %v221_v47 }
 0x1d6   :  { %v305_v49 = vpop.f32.mrf.mxu1 }
 0x1d7   :  { %v306_v50 = vadd.f32 %v337_v48, %v305_v49 }
 0x1d8   :  { %v391_v51 = vpop.f32.mrf.mxu1 }
 0x1d9   :  { %311 = vst [vmem:[#allocation8] sm:$0x3] %v306_v50 }
 0x1da   :  { %v308_v52 = vpop.f32.mrf.mxu1 }
 0x1db   :  { %486 = shalt.err (!%p483_p5)
}
 0x1dc   :  { %321 = dma.vmem_to_hbm [thread:$0]  %s319_s11, 32, %s562_s5, [#allocation4]   ;;  %v392_v53 = vpop.f32.mrf.mxu1 }
 0x1dd   :  { %499 = dma.done.wait [#allocation4], 32  }
 0x1de   :  { %500 = vsyncadd [#allocation4], 4294967264 }
 0x1df   :  { %325 = vsyncpa [#allocation3], 1 }
 0x1e0   :  { %326 = vsyncpa [#allocation6], 1 }
 0x1e1   :  { %327 = vsyncpa [#allocation4], 1 }

</bundles_post_ra>
